<compile_context>
chip_gen: v6e
topology: v6e:2x2x1
jax: 0.10.0
libtpu: 0.0.40
codegen_flags: <defaults>
</compile_context>

<pallas_src>
import jax
import jax.numpy as jnp
from jax.experimental import pallas as pl
from jax.experimental.pallas import tpu as pltpu

_ROW_ALIGN = 8              # minimum row-tile granularity (sublane multiple)
_MIB = 1024 * 1024


def _round_up(v, m):
    return (v + m - 1) // m * m


# --------------------------------------------------------------------------- #
# Kernel
# --------------------------------------------------------------------------- #
def graphsage_kernel(xj_ref, x_ref, w1_ref, b1_ref, w2a_ref, w2b_ref, b2_ref,
                     out_ref):
    """One row-tile of the fused GraphSAGE forward.

    xj_ref : (K, tile_R, C)   gathered neighbor features (compute dtype)
    x_ref  : (tile_R, C)      node features              (compute dtype)
    w1_ref : (C, C)           nn1 weight                 (compute dtype)
    b1_ref : (1, C)           nn1 bias                   (f32)
    w2a/b  : (C, Cout)        nn2 weight split (x half / aggregated half)
    b2_ref : (1, Cout)        nn2 bias                   (f32)
    out_ref: (tile_R, Cout)   output (compute dtype or f32)
    """
    k_total = xj_ref.shape[0]

    # ---- nn1: K-unrolled per-k matmul with a running max --------------------
    # Only a single (tile_R, C) f32 running max stays live; the (K*tile_R, C)
    # intermediate of the fused formulation is never materialized in VMEM.
    # K is small and static, so the loop is statically unrolled.
    hmax = jnp.dot(xj_ref[0], w1_ref[...], preferred_element_type=jnp.float32)
    for k in range(1, k_total):
        h_k = jnp.dot(xj_ref[k], w1_ref[...],
                      preferred_element_type=jnp.float32)
        hmax = jnp.maximum(hmax, h_k)

    # ReLU(h + b1) commutes with max_K for a per-channel bias, so bias + ReLU
    # are applied once, after the reduction (valid only with an un-tampered /
    # zero-free b1, which holds because parameters are used unpadded here).
    hmax = jnp.maximum(hmax + b1_ref[...], 0.0)

    # ---- nn2 on cat([x, hmax], channel) via split weights --------------------
    out = (jnp.dot(x_ref[...], w2a_ref[...], preferred_element_type=jnp.float32)
           + jnp.dot(hmax.astype(w2b_ref.dtype), w2b_ref[...],
                     preferred_element_type=jnp.float32)
           + b2_ref[...])
    out_ref[...] = jnp.maximum(out, 0.0).astype(out_ref.dtype)


# --------------------------------------------------------------------------- #
# Tiling (generation-gated)
# --------------------------------------------------------------------------- #
def _vmem_capacity_bytes():
    try:
        return int(pltpu.get_tpu_info().vmem_capacity_bytes)
    except Exception:                      # conservative fallback (v7x-sized)
        return 64 * _MIB


def _pick_tiling(R, C, Cout, K, compute_itemsize, out_itemsize):
    """Pick (tile_r, vmem_limit_bytes) from the running chip's VMEM size."""
    clp = _round_up(C, 128)        # VMEM lane footprint (NOT the HBM stream)
    coutlp = _round_up(Cout, 128)

    vmem_cap = _vmem_capacity_bytes()
    big_vmem = vmem_cap >= 96 * _MIB                 # v5e / v6e (128 MiB VMEM)
    xj_budget = (12 if big_vmem else 5) * _MIB       # per-step x_j block budget
    vmem_limit = min((96 if big_vmem else 48) * _MIB, vmem_cap)

    xj_row_bytes = K * clp * compute_itemsize
    tile_r = max(_ROW_ALIGN, xj_budget // xj_row_bytes)

    # Guarantee >= 4 grid steps (>= 2 minimum) whenever the row count allows:
    # needed for megacore sharding on v7x's two TensorCores and for DMA overlap.
    tile_r = min(tile_r, max(_ROW_ALIGN, _round_up(pl.cdiv(R, 4), _ROW_ALIGN)))
    tile_r = max(_ROW_ALIGN, (tile_r // _ROW_ALIGN) * _ROW_ALIGN)

    def vmem_per_step(tr):
        xj = K * tr * clp * compute_itemsize           # gathered neighbors
        xv = tr * clp * compute_itemsize               # node features
        ov = tr * coutlp * out_itemsize                # output tile
        live = 2 * tr * clp * 4                        # f32 running max + temp
        weights = ((clp * clp + 2 * clp * coutlp) * compute_itemsize
                   + (clp + coutlp) * 4)
        return 2 * (xj + xv + ov) + live + 2 * weights  # streams double-buffered

    while tile_r > _ROW_ALIGN and vmem_per_step(tile_r) > (vmem_limit * 6) // 10:
        tile_r = max(_ROW_ALIGN, (tile_r // 2 // _ROW_ALIGN) * _ROW_ALIGN)

    return tile_r, vmem_limit


# --------------------------------------------------------------------------- #
# Wrapper
# --------------------------------------------------------------------------- #
def graphsage_forward(x_nchw, edge_index, w1, b1, w2, b2,
                      compute_dtype=jnp.bfloat16, out_dtype=None):
    """x_nchw: (B, C, N, 1) f32, edge_index: (2, B, N, K) int.
    w1: (C, C) (in, out), b1: (C,), w2: (2C, Cout) (in, out), b2: (Cout,).
    Returns (B, Cout, N, 1) in `out_dtype` (default: compute dtype / f32)."""
    B, C, N, _ = x_nchw.shape
    K = edge_index.shape[-1]
    Cout = w2.shape[1]

    cd = jnp.dtype(compute_dtype)
    if out_dtype is None:
        od = jnp.dtype(jnp.float32) if cd == jnp.dtype(jnp.float32) else cd
    else:
        od = jnp.dtype(out_dtype)

    R = B * N
    tile_r, vmem_limit = _pick_tiling(R, C, Cout, K, cd.itemsize, od.itemsize)
    r_pad = _round_up(R, tile_r)
    grid = (r_pad // tile_r,)

    # Channel-last, UNPADDED node features in the compute dtype: the gathered
    # K-amplified x_j stream scales with C (not a 128-padded width).
    x_rc = jnp.transpose(x_nchw[..., 0], (0, 2, 1)).reshape(R, C).astype(cd)
    x_pad = jnp.zeros((r_pad, C), cd).at[:R].set(x_rc)

    # Host-side neighbor gather (data-dependent glue), laid out (K, R, C) so
    # every per-k slab the kernel sees is a clean 2-D block.  Rows >= R alias
    # node 0, so out[R:] is garbage and is sliced off below.
    row_base = (jnp.arange(B, dtype=jnp.int32) * N)[:, None, None]    # (B,1,1)
    idx = edge_index[0].astype(jnp.int32) + row_base                  # (B,N,K)
    idx = jnp.transpose(idx.reshape(R, K), (1, 0))                    # (K,R)
    idx = jnp.zeros((K, r_pad), jnp.int32).at[:, :R].set(idx)
    x_j = x_pad[idx]                                                  # (K,r_pad,C)

    # Parameters (unpadded).  W2 is split into the half multiplying x and the
    # half multiplying the aggregated neighbors (== the channel concat).
    w1_p = w1.astype(cd)
    w2a_p = w2[:C].astype(cd)
    w2b_p = w2[C:].astype(cd)
    b1_p = b1.astype(jnp.float32).reshape(1, C)
    b2_p = b2.astype(jnp.float32).reshape(1, Cout)

    out = pl.pallas_call(
        graphsage_kernel,
        out_shape=jax.ShapeDtypeStruct((r_pad, Cout), od),
        grid=grid,
        in_specs=[
            # x_j is the only large per-step stream; sweep pl.Buffered(3) here
            # if a profile shows exposed DMA (VMEM headroom permitting).
            pl.BlockSpec((K, tile_r, C), lambda r: (0, r, 0)),   # x_j
            pl.BlockSpec((tile_r, C),    lambda r: (r, 0)),      # x
            pl.BlockSpec((C, C),         lambda r: (0, 0)),      # W1
            pl.BlockSpec((1, C),         lambda r: (0, 0)),      # b1
            pl.BlockSpec((C, Cout),      lambda r: (0, 0)),      # W2 (x half)
            pl.BlockSpec((C, Cout),      lambda r: (0, 0)),      # W2 (agg half)
            pl.BlockSpec((1, Cout),      lambda r: (0, 0)),      # b2
        ],
        out_specs=pl.BlockSpec((tile_r, Cout), lambda r: (r, 0)),
        compiler_params=pltpu.CompilerParams(
            dimension_semantics=("parallel",),
            vmem_limit_bytes=vmem_limit),
    )(x_j, x_pad, w1_p, b1_p, w2a_p, w2b_p, b2_p)

    out = out[:R].reshape(B, N, Cout)
    # NCHW transpose kept only to preserve the module's output layout; drop it
    # (and stay channel-last) if the consumer accepts NHWC.
    return jnp.transpose(out, (0, 2, 1))[..., None]                   # (B,Cout,N,1)


# --------------------------------------------------------------------------- #
# Plain-JAX reference (matches the PyTorch forward, f32)
# --------------------------------------------------------------------------- #
def graphsage_reference(x_nchw, edge_index, w1, b1, w2, b2):
    x_nc = jnp.transpose(x_nchw[..., 0], (0, 2, 1))             # (B, N, C)
    idx = edge_index[0]                                          # (B, N, K)
    x_j = jax.vmap(lambda xv, iv: xv[iv])(x_nc, idx)             # (B, N, K, C)
    h = jnp.maximum(jnp.einsum('bnkc,cd->bnkd', x_j, w1) + b1, 0.0)
    hmax = jnp.max(h, axis=2)                                    # (B, N, C)
    cat = jnp.concatenate([x_nc, hmax], axis=-1)                 # (B, N, 2C)
    out = jnp.maximum(jnp.einsum('bnc,cd->bnd', cat, w2) + b2, 0.0)
    return jnp.transpose(out, (0, 2, 1))[..., None]


if __name__ == "__main__":
    B, C_in, C_out, N, K = 2, 4, 8, 16, 8

    key = jax.random.PRNGKey(0)
    k1, k2, k3, k4, k5, k6 = jax.random.split(key, 6)

    x = jax.random.normal(k1, (B, C_in, N, 1), jnp.float32)
    edge_index = jax.random.randint(k2, (2, B, N, K), 0, N, jnp.int32)

    # Conv2d 1x1 weights stored as (in, out); biases per output channel.
    w1 = jax.random.normal(k3, (C_in, C_in), jnp.float32) * 0.5        # nn1
    b1 = jax.random.normal(k4, (C_in,), jnp.float32) * 0.1
    w2 = jax.random.normal(k5, (2 * C_in, C_out), jnp.float32) * 0.5   # nn2
    b2 = jax.random.normal(k6, (C_out,), jnp.float32) * 0.1

    ref = graphsage_reference(x, edge_index, w1, b1, w2, b2)

    # Exact-semantics path (f32 MXU inputs, f32 output) -- tight tolerance.
    out_f32 = graphsage_forward(x, edge_index, w1, b1, w2, b2,
                                compute_dtype=jnp.float32)
    out_f32 = jax.block_until_ready(out_f32)
    assert out_f32.shape == (B, C_out, N, 1)
    assert jnp.allclose(out_f32, ref, atol=1e-5, rtol=1e-5)

    # Throughput path (bf16 MXU inputs + bf16 output, f32 accumulation).
    # Note: hmax is re-quantized to bf16 before the nn2 matmul and the output
    # is bf16; covered by the relaxed tolerance.
    out_bf16 = graphsage_forward(x, edge_index, w1, b1, w2, b2,
                                 compute_dtype=jnp.bfloat16)
    out_bf16 = jax.block_until_ready(out_bf16)
    assert out_bf16.shape == (B, C_out, N, 1)
    assert jnp.allclose(out_bf16.astype(jnp.float32), ref,
                        atol=1.5e-1, rtol=1.5e-1)

    print("KERNEL_OK")
</pallas_src>

<mosaic_0001>
module attributes {stable_mosaic.version = 11 : i64} {
  func.func @graphsage_kernel(%arg0: i32, %arg1: memref<8x8x4xf32, #tpu.memory_space<vmem>>, %arg2: memref<8x4xf32, #tpu.memory_space<vmem>>, %arg3: memref<4x4xf32, #tpu.memory_space<vmem>>, %arg4: memref<1x4xf32, #tpu.memory_space<vmem>>, %arg5: memref<4x8xf32, #tpu.memory_space<vmem>>, %arg6: memref<4x8xf32, #tpu.memory_space<vmem>>, %arg7: memref<1x8xf32, #tpu.memory_space<vmem>>, %arg8: memref<8x8xf32, #tpu.memory_space<vmem>>) attributes {dimension_semantics = [#tpu.dimension_semantics<parallel>], iteration_bounds = array<i64: 4>, scalar_prefetch = 0 : i64, scratch_operands = 0 : i64, tpu.core_type = #tpu.core_type<tc>, window_params = [{transform_indices = @transform_0, window_bounds = array<i64: 8, 8, 4>}, {transform_indices = @transform_1, window_bounds = array<i64: 8, 4>}, {pipeline_mode = #tpu.pipeline_mode<synchronous>, transform_indices = @transform_2, window_bounds = array<i64: 4, 4>}, {pipeline_mode = #tpu.pipeline_mode<synchronous>, transform_indices = @transform_3, window_bounds = array<i64: 1, 4>}, {pipeline_mode = #tpu.pipeline_mode<synchronous>, transform_indices = @transform_4, window_bounds = array<i64: 4, 8>}, {pipeline_mode = #tpu.pipeline_mode<synchronous>, transform_indices = @transform_5, window_bounds = array<i64: 4, 8>}, {pipeline_mode = #tpu.pipeline_mode<synchronous>, transform_indices = @transform_6, window_bounds = array<i64: 1, 8>}, {transform_indices = @transform_7, window_bounds = array<i64: 8, 8>}]} {
    %c0 = arith.constant 0 : index
    %c0_0 = arith.constant 0 : index
    %c0_1 = arith.constant 0 : index
    %0 = vector.load %arg1[%c0, %c0_0, %c0_1] : memref<8x8x4xf32, #tpu.memory_space<vmem>>, vector<1x8x4xf32>
    %1 = vector.shape_cast %0 : vector<1x8x4xf32> to vector<8x4xf32>
    %c0_2 = arith.constant 0 : index
    %c0_3 = arith.constant 0 : index
    %2 = vector.load %arg3[%c0_2, %c0_3] : memref<4x4xf32, #tpu.memory_space<vmem>>, vector<4x4xf32>
    %cst = arith.constant dense<0.000000e+00> : vector<8x4xf32>
    %3 = tpu.matmul %1, %2, %cst {dimension_numbers = #tpu.dot_dimension_numbers<[1], [0], [0], [1], [0, 0, 1, 1], [], []>} : vector<8x4xf32>, vector<4x4xf32>, vector<8x4xf32> -> vector<8x4xf32>
    %c1 = arith.constant 1 : index
    %c0_4 = arith.constant 0 : index
    %c0_5 = arith.constant 0 : index
    %4 = vector.load %arg1[%c1, %c0_4, %c0_5] : memref<8x8x4xf32, #tpu.memory_space<vmem>>, vector<1x8x4xf32>
    %5 = vector.shape_cast %4 : vector<1x8x4xf32> to vector<8x4xf32>
    %c0_6 = arith.constant 0 : index
    %c0_7 = arith.constant 0 : index
    %6 = vector.load %arg3[%c0_6, %c0_7] : memref<4x4xf32, #tpu.memory_space<vmem>>, vector<4x4xf32>
    %cst_8 = arith.constant dense<0.000000e+00> : vector<8x4xf32>
    %7 = tpu.matmul %5, %6, %cst_8 {dimension_numbers = #tpu.dot_dimension_numbers<[1], [0], [0], [1], [0, 0, 1, 1], [], []>} : vector<8x4xf32>, vector<4x4xf32>, vector<8x4xf32> -> vector<8x4xf32>
    %8 = arith.maximumf %3, %7 : vector<8x4xf32>
    %c2 = arith.constant 2 : index
    %c0_9 = arith.constant 0 : index
    %c0_10 = arith.constant 0 : index
    %9 = vector.load %arg1[%c2, %c0_9, %c0_10] : memref<8x8x4xf32, #tpu.memory_space<vmem>>, vector<1x8x4xf32>
    %10 = vector.shape_cast %9 : vector<1x8x4xf32> to vector<8x4xf32>
    %c0_11 = arith.constant 0 : index
    %c0_12 = arith.constant 0 : index
    %11 = vector.load %arg3[%c0_11, %c0_12] : memref<4x4xf32, #tpu.memory_space<vmem>>, vector<4x4xf32>
    %cst_13 = arith.constant dense<0.000000e+00> : vector<8x4xf32>
    %12 = tpu.matmul %10, %11, %cst_13 {dimension_numbers = #tpu.dot_dimension_numbers<[1], [0], [0], [1], [0, 0, 1, 1], [], []>} : vector<8x4xf32>, vector<4x4xf32>, vector<8x4xf32> -> vector<8x4xf32>
    %13 = arith.maximumf %8, %12 : vector<8x4xf32>
    %c3 = arith.constant 3 : index
    %c0_14 = arith.constant 0 : index
    %c0_15 = arith.constant 0 : index
    %14 = vector.load %arg1[%c3, %c0_14, %c0_15] : memref<8x8x4xf32, #tpu.memory_space<vmem>>, vector<1x8x4xf32>
    %15 = vector.shape_cast %14 : vector<1x8x4xf32> to vector<8x4xf32>
    %c0_16 = arith.constant 0 : index
    %c0_17 = arith.constant 0 : index
    %16 = vector.load %arg3[%c0_16, %c0_17] : memref<4x4xf32, #tpu.memory_space<vmem>>, vector<4x4xf32>
    %cst_18 = arith.constant dense<0.000000e+00> : vector<8x4xf32>
    %17 = tpu.matmul %15, %16, %cst_18 {dimension_numbers = #tpu.dot_dimension_numbers<[1], [0], [0], [1], [0, 0, 1, 1], [], []>} : vector<8x4xf32>, vector<4x4xf32>, vector<8x4xf32> -> vector<8x4xf32>
    %18 = arith.maximumf %13, %17 : vector<8x4xf32>
    %c4 = arith.constant 4 : index
    %c0_19 = arith.constant 0 : index
    %c0_20 = arith.constant 0 : index
    %19 = vector.load %arg1[%c4, %c0_19, %c0_20] : memref<8x8x4xf32, #tpu.memory_space<vmem>>, vector<1x8x4xf32>
    %20 = vector.shape_cast %19 : vector<1x8x4xf32> to vector<8x4xf32>
    %c0_21 = arith.constant 0 : index
    %c0_22 = arith.constant 0 : index
    %21 = vector.load %arg3[%c0_21, %c0_22] : memref<4x4xf32, #tpu.memory_space<vmem>>, vector<4x4xf32>
    %cst_23 = arith.constant dense<0.000000e+00> : vector<8x4xf32>
    %22 = tpu.matmul %20, %21, %cst_23 {dimension_numbers = #tpu.dot_dimension_numbers<[1], [0], [0], [1], [0, 0, 1, 1], [], []>} : vector<8x4xf32>, vector<4x4xf32>, vector<8x4xf32> -> vector<8x4xf32>
    %23 = arith.maximumf %18, %22 : vector<8x4xf32>
    %c5 = arith.constant 5 : index
    %c0_24 = arith.constant 0 : index
    %c0_25 = arith.constant 0 : index
    %24 = vector.load %arg1[%c5, %c0_24, %c0_25] : memref<8x8x4xf32, #tpu.memory_space<vmem>>, vector<1x8x4xf32>
    %25 = vector.shape_cast %24 : vector<1x8x4xf32> to vector<8x4xf32>
    %c0_26 = arith.constant 0 : index
    %c0_27 = arith.constant 0 : index
    %26 = vector.load %arg3[%c0_26, %c0_27] : memref<4x4xf32, #tpu.memory_space<vmem>>, vector<4x4xf32>
    %cst_28 = arith.constant dense<0.000000e+00> : vector<8x4xf32>
    %27 = tpu.matmul %25, %26, %cst_28 {dimension_numbers = #tpu.dot_dimension_numbers<[1], [0], [0], [1], [0, 0, 1, 1], [], []>} : vector<8x4xf32>, vector<4x4xf32>, vector<8x4xf32> -> vector<8x4xf32>
    %28 = arith.maximumf %23, %27 : vector<8x4xf32>
    %c6 = arith.constant 6 : index
    %c0_29 = arith.constant 0 : index
    %c0_30 = arith.constant 0 : index
    %29 = vector.load %arg1[%c6, %c0_29, %c0_30] : memref<8x8x4xf32, #tpu.memory_space<vmem>>, vector<1x8x4xf32>
    %30 = vector.shape_cast %29 : vector<1x8x4xf32> to vector<8x4xf32>
    %c0_31 = arith.constant 0 : index
    %c0_32 = arith.constant 0 : index
    %31 = vector.load %arg3[%c0_31, %c0_32] : memref<4x4xf32, #tpu.memory_space<vmem>>, vector<4x4xf32>
    %cst_33 = arith.constant dense<0.000000e+00> : vector<8x4xf32>
    %32 = tpu.matmul %30, %31, %cst_33 {dimension_numbers = #tpu.dot_dimension_numbers<[1], [0], [0], [1], [0, 0, 1, 1], [], []>} : vector<8x4xf32>, vector<4x4xf32>, vector<8x4xf32> -> vector<8x4xf32>
    %33 = arith.maximumf %28, %32 : vector<8x4xf32>
    %c7 = arith.constant 7 : index
    %c0_34 = arith.constant 0 : index
    %c0_35 = arith.constant 0 : index
    %34 = vector.load %arg1[%c7, %c0_34, %c0_35] : memref<8x8x4xf32, #tpu.memory_space<vmem>>, vector<1x8x4xf32>
    %35 = vector.shape_cast %34 : vector<1x8x4xf32> to vector<8x4xf32>
    %c0_36 = arith.constant 0 : index
    %c0_37 = arith.constant 0 : index
    %36 = vector.load %arg3[%c0_36, %c0_37] : memref<4x4xf32, #tpu.memory_space<vmem>>, vector<4x4xf32>
    %cst_38 = arith.constant dense<0.000000e+00> : vector<8x4xf32>
    %37 = tpu.matmul %35, %36, %cst_38 {dimension_numbers = #tpu.dot_dimension_numbers<[1], [0], [0], [1], [0, 0, 1, 1], [], []>} : vector<8x4xf32>, vector<4x4xf32>, vector<8x4xf32> -> vector<8x4xf32>
    %38 = arith.maximumf %33, %37 : vector<8x4xf32>
    %c0_39 = arith.constant 0 : index
    %c0_40 = arith.constant 0 : index
    %39 = vector.load %arg4[%c0_39, %c0_40] : memref<1x4xf32, #tpu.memory_space<vmem>>, vector<1x4xf32>
    %40 = vector.broadcast %39 : vector<1x4xf32> to vector<8x4xf32>
    %41 = arith.addf %38, %40 : vector<8x4xf32>
    %cst_41 = arith.constant 0.000000e+00 : f32
    %42 = vector.broadcast %cst_41 : f32 to vector<8x4xf32>
    %43 = arith.maximumf %41, %42 : vector<8x4xf32>
    %c0_42 = arith.constant 0 : index
    %c0_43 = arith.constant 0 : index
    %44 = vector.load %arg2[%c0_42, %c0_43] : memref<8x4xf32, #tpu.memory_space<vmem>>, vector<8x4xf32>
    %c0_44 = arith.constant 0 : index
    %c0_45 = arith.constant 0 : index
    %45 = vector.load %arg5[%c0_44, %c0_45] : memref<4x8xf32, #tpu.memory_space<vmem>>, vector<4x8xf32>
    %cst_46 = arith.constant dense<0.000000e+00> : vector<8x8xf32>
    %46 = tpu.matmul %44, %45, %cst_46 {dimension_numbers = #tpu.dot_dimension_numbers<[1], [0], [0], [1], [0, 0, 1, 1], [], []>} : vector<8x4xf32>, vector<4x8xf32>, vector<8x8xf32> -> vector<8x8xf32>
    %c0_47 = arith.constant 0 : index
    %c0_48 = arith.constant 0 : index
    %47 = vector.load %arg6[%c0_47, %c0_48] : memref<4x8xf32, #tpu.memory_space<vmem>>, vector<4x8xf32>
    %cst_49 = arith.constant dense<0.000000e+00> : vector<8x8xf32>
    %48 = tpu.matmul %43, %47, %cst_49 {dimension_numbers = #tpu.dot_dimension_numbers<[1], [0], [0], [1], [0, 0, 1, 1], [], []>} : vector<8x4xf32>, vector<4x8xf32>, vector<8x8xf32> -> vector<8x8xf32>
    %49 = arith.addf %46, %48 : vector<8x8xf32>
    %c0_50 = arith.constant 0 : index
    %c0_51 = arith.constant 0 : index
    %50 = vector.load %arg7[%c0_50, %c0_51] : memref<1x8xf32, #tpu.memory_space<vmem>>, vector<1x8xf32>
    %51 = vector.broadcast %50 : vector<1x8xf32> to vector<8x8xf32>
    %52 = arith.addf %49, %51 : vector<8x8xf32>
    %cst_52 = arith.constant 0.000000e+00 : f32
    %53 = vector.broadcast %cst_52 : f32 to vector<8x8xf32>
    %54 = arith.maximumf %52, %53 : vector<8x8xf32>
    %c0_53 = arith.constant 0 : index
    %c0_54 = arith.constant 0 : index
    %55 = vector.load %arg8[%c0_53, %c0_54] : memref<8x8xf32, #tpu.memory_space<vmem>>, vector<8x8xf32>
    tpu.vector_store %arg8[%c0_53, %c0_54], %54 {strides = array<i32>} : memref<8x8xf32, #tpu.memory_space<vmem>>, vector<8x8xf32>,
    return
  }
  func.func @transform_0(%arg0: i32) -> (i32, i32, i32) {
    %c0_i32 = arith.constant 0 : i32
    %c0_i32_0 = arith.constant 0 : i32
    %c0_i32_1 = arith.constant 0 : i32
    return %c0_i32, %arg0, %c0_i32_0 : i32, i32, i32
  }
  func.func @transform_1(%arg0: i32) -> (i32, i32) {
    %c0_i32 = arith.constant 0 : i32
    %c0_i32_0 = arith.constant 0 : i32
    return %arg0, %c0_i32 : i32, i32
  }
  func.func @transform_2(%arg0: i32) -> (i32, i32) {
    %c0_i32 = arith.constant 0 : i32
    %c0_i32_0 = arith.constant 0 : i32
    %c0_i32_1 = arith.constant 0 : i32
    return %c0_i32, %c0_i32_0 : i32, i32
  }
  func.func @transform_3(%arg0: i32) -> (i32, i32) {
    %c0_i32 = arith.constant 0 : i32
    %c0_i32_0 = arith.constant 0 : i32
    %c0_i32_1 = arith.constant 0 : i32
    return %c0_i32, %c0_i32_0 : i32, i32
  }
  func.func @transform_4(%arg0: i32) -> (i32, i32) {
    %c0_i32 = arith.constant 0 : i32
    %c0_i32_0 = arith.constant 0 : i32
    %c0_i32_1 = arith.constant 0 : i32
    return %c0_i32, %c0_i32_0 : i32, i32
  }
  func.func @transform_5(%arg0: i32) -> (i32, i32) {
    %c0_i32 = arith.constant 0 : i32
    %c0_i32_0 = arith.constant 0 : i32
    %c0_i32_1 = arith.constant 0 : i32
    return %c0_i32, %c0_i32_0 : i32, i32
  }
  func.func @transform_6(%arg0: i32) -> (i32, i32) {
    %c0_i32 = arith.constant 0 : i32
    %c0_i32_0 = arith.constant 0 : i32
    %c0_i32_1 = arith.constant 0 : i32
    return %c0_i32, %c0_i32_0 : i32, i32
  }
  func.func @transform_7(%arg0: i32) -> (i32, i32) {
    %c0_i32 = arith.constant 0 : i32
    %c0_i32_0 = arith.constant 0 : i32
    return %arg0, %c0_i32 : i32, i32
  }
}

</mosaic_0001>

<bundles_post_ra>
// kernel: tpu_custom_call.1
= control target key start
LH: loop header
LB: loop body
LE: loop exit
PB: predicated region body
PF: predicated region fallthrough
CT: control target
= control target key end

     0   :  { %s1418_s24 = smov 0   ;;  %s1420_s25 = smov 0   ;;  %s1527_s0 = inlined_call_operand.vmem [shape: f32[8,32,4], index: 0, kind: input, shape index: {}]   ;;  %s1528_s1 = inlined_call_operand.vmem [shape: f32[32,4], index: 1, kind: input, shape index: {}]   ;;  %s1529_s2 = inlined_call_operand.vmem [shape: f32[4,4], index: 2, kind: input, shape index: {}]   ;;  %s1530_s3 = inlined_call_operand.vmem [shape: f32[1,4], index: 3, kind: input, shape index: {}]   ;;  %s1531_s4 = inlined_call_operand.vmem [shape: f32[4,8], index: 4, kind: input, shape index: {}]   ;;  %s1532_s5 = inlined_call_operand.vmem [shape: f32[4,8], index: 5, kind: input, shape index: {}]   ;;  %s1533_s6 = inlined_call_operand.vmem [shape: f32[1,8], index: 6, kind: input, shape index: {}]   ;;  %s1534_s7 = inlined_call_operand.vmem [shape: f32[32,8], index: 7, kind: output, shape index: {}]  }
   0x1   :  { %s1422_s26 = smov 0  }
   0x2 LB: > { %s1215_s27 = sadd.s32 4294967295, %s1374_s26   ;;  %s1435_s28 = sadd.s32 1, %s1374_s26   ;;  %s1374_s26 = sphi %s1422_s26, %s1537_s26   ;;  %s1370_s25 = sphi %s1420_s25, %s1536_s25   ;;  %s1366_s24 = sphi %s1418_s24, %s1535_s24  }
   0x3   : > { %s21_s29 = ssub.s32 %s1374_s26, %s1435_s28  ;;  %s24_s30 = sadd.s32 1, %s1370_s25 }
   0x4   : > { %p22_p0 = scmp.eq.s32.totalorder %s21_s29, 0  ;;  %p31_p1 = scmp.ne.s32.totalorder %s1370_s25, %s1366_s24 }
   0x5   : > { %p32_p2 = scmp.eq.s32.totalorder %s1374_s26, 0  ;;  %p1218_p4 = scmp.ge.s32.totalorder %s1374_s26, 4 }
   0x6   : > { %s1444_s8 = scalar_select %p22_p0, %s1370_s25, %s24_s30  }
   0x7   : > { %p33_p3 = por %p32_p2, %p31_p1  ;;  %229 = sbr.rel (%p1218_p4) target bundleno = 24 (0x18), region = 36 }
   0xc   : > { %232 = sbr.rel (!%p33_p3) target bundleno = 24 (0x18), region = 40  ;;  %s234_s9 = sand.u32 (%p33_p3), 1, %s1370_s25  }
   0xd   : > { %s1220_s10 = sshll.u32 (%p33_p3), %s1374_s26, 3  ;;  %s1219_s11 = sshll.u32 (%p33_p3), %s234_s9, 6 }
   0xe   : > { %s238_s14 = scalar_lea.vmem (%p33_p3), %s1527_s0, %s1220_s10  ;;  %s236_s15 = scalar_lea.vmem (%p33_p3), [#allocation2], %s1219_s11 }
   0xf   : > { %v281_v0 = vld [vmem:[%s238_s14] sm:$0xff] (%p33_p3) }
  0x10   : > { %v283_v1 = vld [vmem:[%s238_s14 + $0x20] sm:$0xff] (%p33_p3)  ;;  %282 = vst [vmem:[%s236_s15] sm:$0xff] (%p33_p3), %v281_v0 }
  0x11   : > { %v285_v2 = vld [vmem:[%s238_s14 + $0x40] sm:$0xff]  ;;  %284 = vst [vmem:[%s236_s15 + $0x8] sm:$0xff] %v283_v1 }
  0x12   : > { %286 = vst [vmem:[%s236_s15 + $0x10] sm:$0xff] %v285_v2  ;;  %v287_v3 = vld [vmem:[%s238_s14 + $0x60] sm:$0xff] }
  0x13   : > { %v289_v4 = vld [vmem:[%s238_s14 + $0x80] sm:$0xff]  ;;  %288 = vst [vmem:[%s236_s15 + $0x18] sm:$0xff] %v287_v3 }
  0x14   : > { %v291_v5 = vld [vmem:[%s238_s14 + $0xa0] sm:$0xff]  ;;  %290 = vst [vmem:[%s236_s15 + $0x20] sm:$0xff] %v289_v4 }
  0x15   : > { %292 = vst [vmem:[%s236_s15 + $0x28] sm:$0xff] %v291_v5  ;;  %v293_v6 = vld [vmem:[%s238_s14 + $0xc0] sm:$0xff] }
  0x16   : > { %v295_v7 = vld [vmem:[%s238_s14 + $0xe0] sm:$0xff]  ;;  %294 = vst [vmem:[%s236_s15 + $0x30] sm:$0xff] %v293_v6 }
  0x17   : > { %296 = vst [vmem:[%s236_s15 + $0x38] sm:$0xff] %v295_v7 }
  0x18 PF: > { %p1221_p5 = scmp.ge.s32.totalorder %s1374_s26, 1  ;;  %p308_p6 = scmp.lt.s32.totalorder %s1374_s26, 5 }
  0x1a   : > { %p309_p7 = pnand %p1221_p5, %p308_p6 }
  0x1b   : > { %s315_s18 = sand.u32 (!%p309_p7), 1, %s1366_s24   ;;  %p349_p8 = scmp.lt.s32.totalorder (!%p309_p7), %s1215_s27, 3 }
  0x1c   : > { %312 = sbr.rel (%p309_p7) target bundleno = 450 (0x1c2), region = 82  ;;  %s1222_s19 = sshll.u32 (!%p309_p7), %s315_s18, 6 }
  0x1d   : > { %s317_s20 = scalar_lea.vmem (!%p309_p7), [#allocation2], %s1222_s19 }
  0x21   : > { %v358_v8 = vld [vmem:[%s1529_s2] sm:$0xf]  ;;  %vm363_vm0 = vcmask 1043456   ;;  %v1376_v9 = vmov 0.0   ;;  %vm359_vm1 = vcmask 31744   ;;  %vm1377_vm2 = vmmov 0  }
  0x22   : > { %1276 = vmatprep.subr.mxu0 %v1376_v9  ;;  %1281 = vmatprep.subr.mxu1 %v1376_v9  ;;  %v357_v10 = vld [vmem:[%s317_s20] sm:$0xff]  ;;  %v1227_v11 = vld [vmem:[%s317_s20 + $0x8] sm:$0xff]  ;;  %v1230_v12 = vld [vmem:[%s317_s20 + $0x10] sm:$0xff]  ;;  %s1539_s27 = smov (!%p349_p8, %s1215_s27), 3  ;;  %vm1142_vm3 = vcmask 64512  }
  0x23   : > { %1277 = vmatpush3.msk.msra.mxu0 %vm363_vm0, %v358_v8  ;;  %1278 = vmatprep.mubr.msk.f32.mxu0 %vm1377_vm2, %v1376_v9  ;;  %v1233_v13 = vld [vmem:[%s317_s20 + $0x18] sm:$0xff]  ;;  %v1236_v14 = vld [vmem:[%s317_s20 + $0x20] sm:$0xff]  ;;  %v1239_v15 = vld [vmem:[%s317_s20 + $0x28] sm:$0xff]  ;;  %s1223_s21 = sshll.u32 %s1539_s27, 3 }
  0x24   : > { %1282 = vmatpush3.msk.msra.mxu1 %vm363_vm0, %v358_v8  ;;  %1283 = vmatprep.mubr.msk.f32.mxu1 %vm1377_vm2, %v1376_v9  ;;  %v1242_v16 = vld [vmem:[%s317_s20 + $0x30] sm:$0xff]  ;;  %v1245_v17 = vld [vmem:[%s317_s20 + $0x38] sm:$0xff]  ;;  %v979_v18 = vld [vmem:[%s1531_s4] sm:$0xf]  ;;  %s352_s30 = scalar_lea.vmem %s1528_s1, %s1223_s21  ;;  %s356_s16 = scalar_lea.vmem %s1534_s7, %s1223_s21 }
  0x25   : > { %1286 = vmatprep.subr.mxu0 %v1376_v9  ;;  %1279 = vmatmul.mubr.msk.f32.vlgmr.msra.gmra.mxu0 %vm359_vm1, %v357_v10  ;;  %v980_v19 = vld [vmem:[%s1532_s5] sm:$0xf] }
  0x26   : > { %1284 = vmatmul.mubr.msk.f32.vlgmr.msra.gmra.mxu1 %vm359_vm1, %v1227_v11  ;;  %1287 = vmatpush3.msk.msra.mxu0 %vm363_vm0, %v358_v8  ;;  %v978_v20 = vld [vmem:[%s352_s30] sm:$0xff] }
  0x27   : > { %1291 = vmatprep.subr.mxu1 %v1376_v9  ;;  %1288 = vmatprep.mubr.msk.f32.mxu0 %vm1377_vm2, %v1376_v9  ;;  %v1248_v41 = vld [vmem:[%s1530_s3] ss:$0 sm:$0xff] }
  0x28   : > { %1292 = vmatpush3.msk.msra.mxu1 %vm363_vm0, %v358_v8  ;;  %1293 = vmatprep.mubr.msk.f32.mxu1 %vm1377_vm2, %v1376_v9  ;;  %v1253_v50 = vld [vmem:[%s1533_s6] ss:$0 sm:$0xff] }
  0x29   : > { %1296 = vmatprep.subr.mxu0 %v1376_v9  ;;  %1289 = vmatmul.mubr.msk.f32.vlgmr.msra.gmra.mxu0 %vm359_vm1, %v1230_v12 }
  0x2a   : > { %1294 = vmatmul.mubr.msk.f32.vlgmr.msra.gmra.mxu1 %vm359_vm1, %v1233_v13  ;;  %1297 = vmatpush3.msk.msra.mxu0 %vm363_vm0, %v358_v8 }
  0x2b   : > { %1301 = vmatprep.subr.mxu1 %v1376_v9  ;;  %1298 = vmatprep.mubr.msk.f32.mxu0 %vm1377_vm2, %v1376_v9 }
  0x2c   : > { %1302 = vmatpush3.msk.msra.mxu1 %vm363_vm0, %v358_v8  ;;  %1303 = vmatprep.mubr.msk.f32.mxu1 %vm1377_vm2, %v1376_v9 }
  0x2d   : > { %1306 = vmatprep.subr.mxu0 %v1376_v9  ;;  %1299 = vmatmul.mubr.msk.f32.vlgmr.msra.gmra.mxu0 %vm359_vm1, %v1236_v14 }
  0x2e   : > { %1304 = vmatmul.mubr.msk.f32.vlgmr.msra.gmra.mxu1 %vm359_vm1, %v1239_v15  ;;  %1307 = vmatpush3.msk.msra.mxu0 %vm363_vm0, %v358_v8 }
  0x2f   : > { %1311 = vmatprep.subr.mxu1 %v1376_v9  ;;  %1308 = vmatprep.mubr.msk.f32.mxu0 %vm1377_vm2, %v1376_v9 }
  0x30   : > { %1312 = vmatpush3.msk.msra.mxu1 %vm363_vm0, %v358_v8  ;;  %1313 = vmatprep.mubr.msk.f32.mxu1 %vm1377_vm2, %v1376_v9 }
  0x31   : > { %1309 = vmatmul.mubr.msk.f32.vlgmr.msra.gmra.mxu0 %vm359_vm1, %v1242_v16  ;;  %1316 = vmatprep.subr.mxu0 %v1376_v9 }
  0x32   : > { %1314 = vmatmul.mubr.msk.f32.vlgmr.msra.gmra.mxu1 %vm359_vm1, %v1245_v17  ;;  %1321 = vmatprep.subr.mxu1 %v1376_v9 }
  0x33   : > { %1323 = vmatprep.mubr.msk.f32.mxu1 %vm1377_vm2, %v1376_v9  ;;  %1318 = vmatprep.mubr.msk.f32.mxu0 %vm1377_vm2, %v1376_v9 }
  0x34   : > { %1322 = vmatpush3.msk.msra.mxu1 %vm363_vm0, %v979_v18  ;;  %1317 = vmatpush3.msk.msra.mxu0 %vm363_vm0, %v980_v19 }
  0x36   : > { %1324 = vmatmul.mubr.msk.f32.vlgmr.msra.gmra.mxu1 %vm359_vm1, %v978_v20 }
  0xe5   : > { %v433_v21 = vpop.f32.mrf.mxu0 }
  0xe6   : > { %v508_v22 = vpop.f32.mrf.mxu1 }
  0xe7   : > { %v1280_v23 = vpop.f32.mrf.mxu0  ;;  %v512_v24 = vmax.f32 %v433_v21, %v508_v22 }
  0xe8   : > { %v1285_v25 = vpop.f32.mrf.mxu1 }
  0xe9   : > { %v584_v26 = vpop.f32.mrf.mxu0 }
  0xea   : > { %v588_v27 = vmax.f32 %v512_v24, %v584_v26  ;;  %v660_v28 = vpop.f32.mrf.mxu1 }
  0xeb   : > { %v1290_v29 = vpop.f32.mrf.mxu0 }
  0xec   : > { %v664_v30 = vmax.f32 %v588_v27, %v660_v28  ;;  %v1295_v31 = vpop.f32.mrf.mxu1 }
  0xed   : > { %v736_v32 = vpop.f32.mrf.mxu0 }
  0xee   : > { %v740_v33 = vmax.f32 %v664_v30, %v736_v32  ;;  %v812_v34 = vpop.f32.mrf.mxu1 }
  0xef   : > { %v1300_v35 = vpop.f32.mrf.mxu0 }
  0xf0   : > { %v816_v36 = vmax.f32 %v740_v33, %v812_v34  ;;  %v1305_v37 = vpop.f32.mrf.mxu1 }
  0xf1   : > { %v888_v38 = vpop.f32.mrf.mxu0 }
  0xf2   : > { %v892_v39 = vmax.f32 %v816_v36, %v888_v38  ;;  %v964_v40 = vpop.f32.mrf.mxu1 }
  0xf3   : > { %v1310_v42 = vpop.f32.mrf.mxu0 }
  0xf4   : > { %v968_v43 = vmax.f32 %v892_v39, %v964_v40  ;;  %v1315_v44 = vpop.f32.mrf.mxu1 }
  0xf6   : > { %v976_v45 = vadd.f32 %v1248_v41, %v968_v43  ;;  %v1129_v47 = vpop.f32.mrf.mxu1 }
  0xf8   : > { %v977_v46 = vmax.f32 %v976_v45, 0.0  ;;  %v1325_v48 = vpop.f32.mrf.mxu1 }
  0xfa   : > { %1319 = vmatmul.mubr.msk.f32.vlgmr.msra.gmra.mxu0 %vm359_vm1, %v977_v46 }
 0x1ba   : > { %v1053_v49 = vpop.f32.mrf.mxu0 }
 0x1bb   : > { %v1130_v51 = vadd.f32 %v1129_v47, %v1053_v49 }
 0x1bc   : > { %v1320_v52 = vpop.f32.mrf.mxu0 }
 0x1bd   : > { %v1140_v53 = vadd.f32 %v1253_v50, %v1130_v51 }
 0x1bf   : > { %v1141_v54 = vmax.f32 %v1140_v53, 0.0 }
 0x1c1   : > { %1143 = vst.msk [vmem:[%s356_s16] sm:$0xff] %vm1142_vm3, %v1141_v54 }
 0x1c2 PF: > { %p14_p9 = scmp.ge.s32.totalorder %s1435_s28, 6   ;;  %s1535_s24 = smov %s1370_s25 }
 0x1c3   : > { %s1536_s25 = smov %s1444_s8  ;;  %s1537_s26 = smov %s1435_s28 }
 0x1c4   :  { %16 = sbr.rel (!%p14_p9) target bundleno = 2 (0x2), region = 131 }

</bundles_post_ra>
